<compile_context>
chip_gen: v7x
topology: tpu7x:2x2x1
jax: 0.10.0
libtpu: 0.0.40
codegen_flags: <defaults>
</compile_context>

<pallas_src>
import math

import jax
import jax.numpy as jnp
from jax import lax
from jax.experimental import pallas as pl
from jax.experimental.pallas import tpu as pltpu


def _attention_kernel(x_ref, wqkv_ref, wproj_ref, bias_ref, o_ref, acc_ref):
    # blocks:
    #   x_ref     : (1, N, C)        bf16   (same block for every head)
    #   wqkv_ref  : (1, C, 3*Dh)     bf16   (q columns pre-scaled by Dh**-0.5)
    #   wproj_ref : (1, Dh, C)       bf16   (rows of proj weight for this head)
    #   bias_ref  : (1, C)           f32
    #   o_ref     : (1, N, C)        (output dtype)
    #   acc_ref   : (N, C)           f32 scratch (persists across the head axis)
    h = pl.program_id(1)
    head_dim = wproj_ref.shape[1]

    @pl.when(h == 0)
    def _init():
        acc_ref[...] = jnp.zeros_like(acc_ref)

    x = x_ref[0]                                   # (N, C) bf16
    w = wqkv_ref[0]                                # (C, 3*Dh) bf16

    # fused q/k/v projection for this head: one MXU matmul, f32 accumulation
    qkv = jnp.dot(x, w, preferred_element_type=jnp.float32)       # (N, 3*Dh)
    q = qkv[:, 0 * head_dim:1 * head_dim].astype(jnp.bfloat16)
    k = qkv[:, 1 * head_dim:2 * head_dim].astype(jnp.bfloat16)
    v = qkv[:, 2 * head_dim:3 * head_dim].astype(jnp.bfloat16)

    # scores = (q * scale) @ k^T ; scale already folded into the q weights.
    s = lax.dot_general(q, k, (((1,), (1,)), ((), ())),
                        preferred_element_type=jnp.float32)        # (N, N)

    # numerically stable softmax (f32); reciprocal-multiply instead of divide
    s = s - jnp.max(s, axis=-1, keepdims=True)
    p = jnp.exp(s)
    p = p * pl.reciprocal(jnp.sum(p, axis=-1, keepdims=True), approx=True)

    attn_out = jnp.dot(p.astype(jnp.bfloat16), v,
                       preferred_element_type=jnp.float32)         # (N, Dh)

    # fused per-head partial output projection, accumulated over heads
    acc_ref[...] += jnp.dot(attn_out.astype(jnp.bfloat16), wproj_ref[0],
                            preferred_element_type=jnp.float32)    # (N, C)

    @pl.when(h == pl.num_programs(1) - 1)
    def _finalize():
        o_ref[0] = (acc_ref[...] + bias_ref[...]).astype(o_ref.dtype)


def attention_pallas(x, w_qkv, w_proj, b_proj, num_heads):
    """x: (B, N, C). w_qkv: (C, 3C). w_proj: (C, C). b_proj: (C,)."""
    B, N, C = x.shape
    H = num_heads
    Dh = C // H
    scale = Dh ** (-0.5)

    # --- host-side weight preparation (done once, outside the hot path) ---
    # qkv columns are ordered [qkv_idx, head, dim] (matches the PyTorch
    # reshape(B, N, 3, H, Dh)).  Build a per-head fused weight (H, C, 3*Dh)
    # and fold the softmax scale into the q columns (free).
    w = w_qkv.reshape(C, 3, H, Dh)
    w = w * jnp.array([scale, 1.0, 1.0], dtype=w_qkv.dtype)[None, :, None, None]
    w_qkv_ph = jnp.transpose(w, (2, 0, 1, 3)).reshape(H, C, 3 * Dh)

    # per-head rows of the output projection: (H, Dh, C)
    w_proj_ph = w_proj.reshape(H, Dh, C)

    # bf16 operands for the MXU (f32 accumulation inside the kernel)
    x_bf = x.astype(jnp.bfloat16)
    w_qkv_ph = w_qkv_ph.astype(jnp.bfloat16)
    w_proj_ph = w_proj_ph.astype(jnp.bfloat16)
    b_proj2d = b_proj.reshape(1, C).astype(jnp.float32)

    # TODO(synk): for long sequences (N >> 1k) add flash-style kv tiling with
    # online-softmax accumulators so VMEM stays O(tq*tk) (needed on v7x 64MiB).
    return pl.pallas_call(
        _attention_kernel,
        out_shape=jax.ShapeDtypeStruct((B, N, C), x.dtype),
        grid_spec=pltpu.PrefetchScalarGridSpec(
            num_scalar_prefetch=0,
            # heads last: reduction axis for the fused output projection
            grid=(B, H),
            in_specs=[
                pl.BlockSpec((1, N, C), lambda b, h: (b, 0, 0)),       # x
                pl.BlockSpec((1, C, 3 * Dh), lambda b, h: (h, 0, 0)),  # qkv W
                pl.BlockSpec((1, Dh, C), lambda b, h: (h, 0, 0)),      # proj W
                pl.BlockSpec((1, C), lambda b, h: (0, 0)),             # proj b
            ],
            out_specs=pl.BlockSpec((1, N, C), lambda b, h: (b, 0, 0)),
            scratch_shapes=[pltpu.VMEM((N, C), jnp.float32)],
        ),
        compiler_params=pltpu.CompilerParams(
            dimension_semantics=("parallel", "arbitrary")),
    )(x_bf, w_qkv_ph, w_proj_ph, b_proj2d)


def attention_ref(x, w_qkv, w_proj, b_proj, num_heads):
    """Pure-JAX (f32) reference mirroring the PyTorch forward."""
    B, N, C = x.shape
    Dh = C // num_heads
    scale = Dh ** (-0.5)
    qkv = x @ w_qkv                                   # (B, N, 3C)
    qkv = qkv.reshape(B, N, 3, num_heads, Dh)
    qkv = jnp.transpose(qkv, (2, 0, 3, 1, 4))         # (3, B, H, N, Dh)
    q, k, v = qkv[0], qkv[1], qkv[2]
    attn = jnp.einsum('bhnd,bhmd->bhnm', q, k) * scale
    attn = jax.nn.softmax(attn, axis=-1)
    out = jnp.einsum('bhnm,bhmd->bhnd', attn, v)      # (B, H, N, Dh)
    out = jnp.transpose(out, (0, 2, 1, 3)).reshape(B, N, C)
    return out @ w_proj + b_proj


if __name__ == "__main__":
    B, N, C = 2, 8, 32
    num_heads = 8

    key = jax.random.PRNGKey(0)
    kx, kqkv, kp, kb = jax.random.split(key, 4)

    x = jax.random.normal(kx, (B, N, C), dtype=jnp.float32)
    # deterministic synthetic parameters (not a checkpoint load)
    w_qkv = jax.random.normal(kqkv, (C, 3 * C), dtype=jnp.float32) / math.sqrt(C)
    w_proj = jax.random.normal(kp, (C, C), dtype=jnp.float32) / math.sqrt(C)
    b_proj = jax.random.normal(kb, (C,), dtype=jnp.float32) * 0.01

    y = attention_pallas(x, w_qkv, w_proj, b_proj, num_heads)
    y = jax.block_until_ready(y)

    y_ref = attention_ref(x, w_qkv, w_proj, b_proj, num_heads)
    # bf16 MXU operands + approx reciprocal give ~1e-2-level absolute error at
    # these magnitudes; tolerance is set well above that but far below any
    # structural-bug signal (which would be O(1)).
    assert jnp.allclose(y, y_ref, atol=1e-1, rtol=1e-1), (
        float(jnp.max(jnp.abs(y - y_ref))))

    print("KERNEL_OK")
</pallas_src>

<mosaic_0001>
module attributes {stable_mosaic.version = 11 : i64} {
  func.func @_attention_kernel(%arg0: i32, %arg1: i32, %arg2: memref<1x8x32xbf16, #tpu.memory_space<vmem>>, %arg3: memref<1x32x12xbf16, #tpu.memory_space<vmem>>, %arg4: memref<1x4x32xbf16, #tpu.memory_space<vmem>>, %arg5: memref<1x32xf32, #tpu.memory_space<vmem>>, %arg6: memref<1x8x32xf32, #tpu.memory_space<vmem>>, %arg7: memref<8x32xf32, #tpu.memory_space<vmem>>) attributes {dimension_semantics = [#tpu.dimension_semantics<parallel>, #tpu.dimension_semantics<arbitrary>], iteration_bounds = array<i64: 2, 8>, scalar_prefetch = 0 : i64, scratch_operands = 1 : i64, tpu.core_type = #tpu.core_type<tc>, window_params = [{transform_indices = @transform_0, window_bounds = array<i64: 1, 8, 32>}, {transform_indices = @transform_1, window_bounds = array<i64: 1, 32, 12>}, {transform_indices = @transform_2, window_bounds = array<i64: 1, 4, 32>}, {pipeline_mode = #tpu.pipeline_mode<synchronous>, transform_indices = @transform_3, window_bounds = array<i64: 1, 32>}, {transform_indices = @transform_4, window_bounds = array<i64: 1, 8, 32>}]} {
    %c0_i32 = arith.constant 0 : i32
    %0 = arith.cmpi eq, %arg1, %c0_i32 : i32
    %1 = arith.extui %0 : i1 to i32
    %c0_i32_0 = arith.constant 0 : i32
    %2 = arith.cmpi ne, %1, %c0_i32_0 : i32
    scf.if %2 {
      %cst_19 = arith.constant 0.000000e+00 : f32
      %37 = vector.broadcast %cst_19 : f32 to vector<8x32xf32>
      %c0_20 = arith.constant 0 : index
      %c0_21 = arith.constant 0 : index
      %38 = vector.load %arg7[%c0_20, %c0_21] : memref<8x32xf32, #tpu.memory_space<vmem>>, vector<8x32xf32>
      tpu.vector_store %arg7[%c0_20, %c0_21], %37 {strides = array<i32>} : memref<8x32xf32, #tpu.memory_space<vmem>>, vector<8x32xf32>,
    } else {
    }
    %c0 = arith.constant 0 : index
    %c0_1 = arith.constant 0 : index
    %c0_2 = arith.constant 0 : index
    %3 = vector.load %arg2[%c0, %c0_1, %c0_2] : memref<1x8x32xbf16, #tpu.memory_space<vmem>>, vector<1x8x32xbf16>
    %4 = vector.shape_cast %3 : vector<1x8x32xbf16> to vector<8x32xbf16>
    %c0_3 = arith.constant 0 : index
    %c0_4 = arith.constant 0 : index
    %c0_5 = arith.constant 0 : index
    %5 = vector.load %arg3[%c0_3, %c0_4, %c0_5] : memref<1x32x12xbf16, #tpu.memory_space<vmem>>, vector<1x32x12xbf16>
    %6 = vector.shape_cast %5 : vector<1x32x12xbf16> to vector<32x12xbf16>
    %cst = arith.constant dense<0.000000e+00> : vector<8x12xf32>
    %7 = tpu.matmul %4, %6, %cst {dimension_numbers = #tpu.dot_dimension_numbers<[1], [0], [0], [1], [0, 0, 1, 1], [], []>} : vector<8x32xbf16>, vector<32x12xbf16>, vector<8x12xf32> -> vector<8x12xf32>
    %8 = vector.extract_strided_slice %7 {offsets = [0, 0], sizes = [8, 4], strides = [1, 1]} : vector<8x12xf32> to vector<8x4xf32>
    %9 = arith.truncf %8 : vector<8x4xf32> to vector<8x4xbf16>
    %10 = vector.extract_strided_slice %7 {offsets = [0, 4], sizes = [8, 4], strides = [1, 1]} : vector<8x12xf32> to vector<8x4xf32>
    %11 = arith.truncf %10 : vector<8x4xf32> to vector<8x4xbf16>
    %12 = vector.extract_strided_slice %7 {offsets = [0, 8], sizes = [8, 4], strides = [1, 1]} : vector<8x12xf32> to vector<8x4xf32>
    %13 = arith.truncf %12 : vector<8x4xf32> to vector<8x4xbf16>
    %cst_6 = arith.constant dense<0.000000e+00> : vector<8x8xf32>
    %14 = tpu.matmul %9, %11, %cst_6 {dimension_numbers = #tpu.dot_dimension_numbers<[1], [1], [0], [0], [0, 0, 1, 0], [], []>} : vector<8x4xbf16>, vector<8x4xbf16>, vector<8x8xf32> -> vector<8x8xf32>
    %cst_7 = arith.constant dense<0xFF800000> : vector<8xf32>
    %15 = vector.multi_reduction <maximumf>, %14, %cst_7 [1] : vector<8x8xf32> to vector<8xf32>
    %16 = vector.shape_cast %15 : vector<8xf32> to vector<8x1xf32>
    %17 = vector.broadcast %16 : vector<8x1xf32> to vector<8x8xf32>
    %18 = arith.subf %14, %17 : vector<8x8xf32>
    %19 = math.exp %18 : vector<8x8xf32>
    %cst_8 = arith.constant dense<0.000000e+00> : vector<8xf32>
    %20 = vector.multi_reduction <add>, %19, %cst_8 [1] : vector<8x8xf32> to vector<8xf32>
    %21 = vector.shape_cast %20 : vector<8xf32> to vector<8x1xf32>
    %22 = tpu.reciprocal %21 {approx = true} : vector<8x1xf32> -> vector<8x1xf32>
    %23 = vector.broadcast %22 : vector<8x1xf32> to vector<8x8xf32>
    %24 = arith.mulf %19, %23 : vector<8x8xf32>
    %25 = arith.truncf %24 : vector<8x8xf32> to vector<8x8xbf16>
    %cst_9 = arith.constant dense<0.000000e+00> : vector<8x4xf32>
    %26 = tpu.matmul %25, %13, %cst_9 {dimension_numbers = #tpu.dot_dimension_numbers<[1], [0], [0], [1], [0, 0, 1, 1], [], []>} : vector<8x8xbf16>, vector<8x4xbf16>, vector<8x4xf32> -> vector<8x4xf32>
    %c0_10 = arith.constant 0 : index
    %c0_11 = arith.constant 0 : index
    %27 = vector.load %arg7[%c0_10, %c0_11] : memref<8x32xf32, #tpu.memory_space<vmem>>, vector<8x32xf32>
    %28 = arith.truncf %26 : vector<8x4xf32> to vector<8x4xbf16>
    %c0_12 = arith.constant 0 : index
    %c0_13 = arith.constant 0 : index
    %c0_14 = arith.constant 0 : index
    %29 = vector.load %arg4[%c0_12, %c0_13, %c0_14] : memref<1x4x32xbf16, #tpu.memory_space<vmem>>, vector<1x4x32xbf16>
    %30 = vector.shape_cast %29 : vector<1x4x32xbf16> to vector<4x32xbf16>
    %cst_15 = arith.constant dense<0.000000e+00> : vector<8x32xf32>
    %31 = tpu.matmul %28, %30, %cst_15 {dimension_numbers = #tpu.dot_dimension_numbers<[1], [0], [0], [1], [0, 0, 1, 1], [], []>} : vector<8x4xbf16>, vector<4x32xbf16>, vector<8x32xf32> -> vector<8x32xf32>
    %32 = arith.addf %27, %31 : vector<8x32xf32>
    %c0_16 = arith.constant 0 : index
    %c0_17 = arith.constant 0 : index
    %33 = vector.load %arg7[%c0_16, %c0_17] : memref<8x32xf32, #tpu.memory_space<vmem>>, vector<8x32xf32>
    tpu.vector_store %arg7[%c0_16, %c0_17], %32 {strides = array<i32>} : memref<8x32xf32, #tpu.memory_space<vmem>>, vector<8x32xf32>,
    %c7_i32 = arith.constant 7 : i32
    %34 = arith.cmpi eq, %arg1, %c7_i32 : i32
    %35 = arith.extui %34 : i1 to i32
    %c0_i32_18 = arith.constant 0 : i32
    %36 = arith.cmpi ne, %35, %c0_i32_18 : i32
    scf.if %36 {
      %c0_19 = arith.constant 0 : index
      %c0_20 = arith.constant 0 : index
      %37 = vector.load %arg7[%c0_19, %c0_20] : memref<8x32xf32, #tpu.memory_space<vmem>>, vector<8x32xf32>
      %c0_21 = arith.constant 0 : index
      %c0_22 = arith.constant 0 : index
      %38 = vector.load %arg5[%c0_21, %c0_22] : memref<1x32xf32, #tpu.memory_space<vmem>>, vector<1x32xf32>
      %39 = vector.broadcast %38 : vector<1x32xf32> to vector<8x32xf32>
      %40 = arith.addf %37, %39 : vector<8x32xf32>
      %c0_23 = arith.constant 0 : index
      %c0_24 = arith.constant 0 : index
      %c0_25 = arith.constant 0 : index
      %41 = vector.load %arg6[%c0_23, %c0_24, %c0_25] : memref<1x8x32xf32, #tpu.memory_space<vmem>>, vector<1x8x32xf32>
      %42 = vector.shape_cast %41 : vector<1x8x32xf32> to vector<8x32xf32>
      %43 = vector.shape_cast %40 : vector<8x32xf32> to vector<1x8x32xf32>
      tpu.vector_store %arg6[%c0_23, %c0_24, %c0_25], %43 {strides = array<i32>} : memref<1x8x32xf32, #tpu.memory_space<vmem>>, vector<1x8x32xf32>,
    } else {
    }
    return
  }
  func.func @transform_0(%arg0: i32, %arg1: i32) -> (i32, i32, i32) {
    %c0_i32 = arith.constant 0 : i32
    %c0_i32_0 = arith.constant 0 : i32
    %c0_i32_1 = arith.constant 0 : i32
    return %arg0, %c0_i32, %c0_i32_0 : i32, i32, i32
  }
  func.func @transform_1(%arg0: i32, %arg1: i32) -> (i32, i32, i32) {
    %c0_i32 = arith.constant 0 : i32
    %c0_i32_0 = arith.constant 0 : i32
    %c0_i32_1 = arith.constant 0 : i32
    return %arg1, %c0_i32, %c0_i32_0 : i32, i32, i32
  }
  func.func @transform_2(%arg0: i32, %arg1: i32) -> (i32, i32, i32) {
    %c0_i32 = arith.constant 0 : i32
    %c0_i32_0 = arith.constant 0 : i32
    %c0_i32_1 = arith.constant 0 : i32
    return %arg1, %c0_i32, %c0_i32_0 : i32, i32, i32
  }
  func.func @transform_3(%arg0: i32, %arg1: i32) -> (i32, i32) {
    %c0_i32 = arith.constant 0 : i32
    %c0_i32_0 = arith.constant 0 : i32
    %c0_i32_1 = arith.constant 0 : i32
    return %c0_i32, %c0_i32_0 : i32, i32
  }
  func.func @transform_4(%arg0: i32, %arg1: i32) -> (i32, i32, i32) {
    %c0_i32 = arith.constant 0 : i32
    %c0_i32_0 = arith.constant 0 : i32
    %c0_i32_1 = arith.constant 0 : i32
    return %arg0, %c0_i32, %c0_i32_0 : i32, i32, i32
  }
}

</mosaic_0001>

<bundles_post_ra>
// kernel: tpu_custom_call.1
= control target key start
LH: loop header
LB: loop body
LE: loop exit
PB: predicated region body
PF: predicated region fallthrough
CT: control target
= control target key end

     0   :  { %9 = vsyncpa [#allocation4], 0  ;;  %s1031_s0 = inlined_call_operand.vmem [shape: bf16[2,8,32], index: 0, kind: input, shape index: {}]   ;;  %s1032_s1 = inlined_call_operand.vmem [shape: bf16[8,32,12], index: 1, kind: input, shape index: {}]   ;;  %s1033_s2 = inlined_call_operand.vmem [shape: bf16[8,4,32], index: 2, kind: input, shape index: {}]   ;;  %s1034_s3 = inlined_call_operand.vmem [shape: f32[1,32], index: 3, kind: input, shape index: {}]   ;;  %s1035_s4 = inlined_call_operand.hbm [shape: f32[2,8,32], index: 4, kind: output, shape index: {}]  }
   0x1   :  { %11 = vsyncpa [#allocation4 + $0x1], 0  ;;  %s865_s15 = smov 0   ;;  %s867_s16 = smov 0  }
   0x2   :  { %s869_s17 = smov 0   ;;  %s871_s18 = smov 0  }
   0x3   :  { %s873_s19 = smov 0   ;;  %s875_s20 = smov 0  }
   0x4   :  { %s877_s21 = smov 0   ;;  %s879_s22 = smov 0  }
   0x5 LB: > { %1039 = sst [smem:[#allocation6_spill]] %s828_s21  ;;  %s597_s23 = sadd.s32 4294967295, %s832_s22   ;;  %s832_s22 = sphi %s879_s22, %s17_s22   ;;  %s828_s21 = sphi %s877_s21, %s1047_s21   ;;  %s824_s20 = sphi %s875_s20, %s1052_s20   ;;  %s820_s19 = sphi %s873_s19, %s1045_s19   ;;  %s816_s18 = sphi %s871_s18, %s1051_s18   ;;  %s812_s17 = sphi %s869_s17, %s1050_s17   ;;  %s808_s16 = sphi %s867_s16, %s1049_s16   ;;  %s804_s15 = sphi %s865_s15, %s1048_s15  }
   0x6   : > { %s598_s24 = sadd.s32 4294967294, %s832_s22   ;;  %s26_s25 = sadd.s32 1, %s824_s20 }
   0x7   : > { %p27_p0 = scmp.ge.s32.totalorder %s26_s25, 8  ;;  %s29_s26 = sadd.s32 1, %s828_s21 }
   0x8   : > { %p145_p1 = scmp.ne.s32.totalorder %s812_s17, %s808_s16  ;;  %p146_p2 = scmp.eq.s32.totalorder %s597_s23, 15 }
   0x9   : > { %s1054_s25 = smov (%p27_p0, %s26_s25), 0  ;;  %s1056_s26 = smov (!%p27_p0, %s29_s26), %s828_s21 }
   0xa   : > { %1040 = sst [smem:[#allocation7_spill]] %s1054_s25  ;;  %p914_p3 = por %p146_p2, %p145_p1 }
   0xb   : > { %p151_p4 = scmp.ne.s32.totalorder %s808_s16, %s804_s15  ;;  %p31_p5 = scmp.ge.s32.totalorder %s1056_s26, 2 }
   0xc   : > { %p152_p6 = scmp.eq.s32.totalorder %s598_s24, 15  ;;  %p601_p7 = scmp.ge.s32.totalorder %s832_s22, 1 }
   0xd   : > { %p195_p8 = scmp.lt.s32.totalorder %s832_s22, 17  ;;  %s1058_s26 = smov (%p31_p5, %s1056_s26), 0 }
   0xe   : > { %1042 = sst [smem:[#allocation8_spill]] %s1058_s26  ;;  %p924_p9 = por %p152_p6, %p151_p4 }
   0xf   : > { %p196_p10 = pnand %p601_p7, %p195_p8  ;;  %s132_s29 = ssub.s32 %s828_s21, %s1058_s26 }
  0x10   : > { %s135_s30 = sadd.s32 1, %s812_s17  ;;  %p133_p11 = scmp.eq.s32.totalorder %s132_s29, 0 }
  0x11   : > { %199 = sbr.rel (%p196_p10) target bundleno = 1371 (0x55b), region = 36  ;;  %s1037_s6 = sand.u32 (!%p196_p10), 1, %s808_s16  }
  0x12   : > { %s932_s5 = scalar_select %p133_p11, %s812_s17, %s135_s30  }
  0x13   : > { %p229_p12 = scmp.lt.s32.totalorder (!%p196_p10), %s820_s19, 1  ;;  %s938_s7 = sshll.u32 (!%p196_p10), %s1037_s6, 3 }
  0x14   : > { %p233_p13 = scmp.lt.s32.totalorder (!%p196_p10), %s816_s18, 7  ;;  %s228_s21 = scalar_lea.vmem (!%p196_p10), [#allocation3], %s938_s7 }
  0x15   : > { %p607_p0 = scmp.ne.s32.totalorder (!%p196_p10), %s816_s18, 0 }
  0x18   : > { %s230_s8 = scalar_select %p229_p12, %s820_s19, 1 }
  0x19   : > { %s234_s9 = scalar_select %p233_p13, %s816_s18, 7 }
  0x1a   : > { %s603_s10 = sshll.u32 %s230_s8, 2  ;;  %246 = sbr.rel (%p607_p0) target bundleno = 33 (0x21), region = 40  ;;  %vm247_vm0 = vcmask (!%p607_p0), 261120   ;;  %v834_v0 = vmov (!%p607_p0), 0.0  }
  0x1b   : > { %s232_s13 = scalar_lea.vmem %s1031_s0, %s603_s10  ;;  %s620_s14 = sshll.u32 %s234_s9, 4  ;;  %248 = vst.msk [vmem:[#allocation2] sm:$0xff] (!%p607_p0), %vm247_vm0, %v834_v0 }
  0x1c   : > { %s237_s29 = scalar_lea.vmem %s1032_s1, %s620_s14  ;;  %s606_s30 = sshll.u32 %s234_s9, 1 }
  0x1d   : > { %s952_s6 = scalar_lea.vmem %s1033_s2, %s606_s30 }
  0x21 PF: > { %v732_v1 = vld [vmem:[%s237_s29] sm:$0xff]   ;;  %v835_v2 = vmov 0.0   ;;  %v733_v3 = vld [vmem:[%s237_s29 + $0x8] sm:$0xff]   ;;  %vm836_vm1 = vmmov 0   ;;  %vm266_vm2 = vcmask 261120   ;;  %s837_s25 = smov 124  }
  0x22   : > { %630 = vmatprep.subr.bf16.mxu0 %v835_v2  ;;  %638 = vmatprep.subr.bf16.mxu1 %v835_v2  ;;  %v249_v4 = vld [vmem:[%s232_s13] sm:$0xf]  ;;  %vm314_vm3 = vcmask 31744   ;;  %vm361_vm4 = vcmask 64512   ;;  %s838_s26 = smov 120   ;;  %vm429_vm5 = vcmask 1041408  }
  0x23   : > { %631 = vmatpush3.bf16.msra.mxu0 %v732_v1  ;;  %634 = vmatprep.mubr.msk.bf16.mxu0 %vm836_vm1, %v835_v2  ;;  %v425_v22 = vld [vmem:[%s952_s6] sm:$0x3]  ;;  %vm379_vm6 = vcmask 1043456   ;;  %p614_p1 = scmp.ne.s32.totalorder %s816_s18, 7 }
  0x24   : > { %632 = vmatprep.subr.bf16.mxu0 %v835_v2  ;;  %640 = vmatprep.mubr.msk.bf16.mxu1 %vm836_vm1, %v835_v2  ;;  %v431_v23 = vsel %vm429_vm5, %v425_v22, 0  ;;  %v423_v35 = vld [vmem:[#allocation2] sm:$0xff] }
  0x25   : > { %v615_v42 = vld [vmem:[%s1034_s3] ss:$0 sm:$0xff] (!%p614_p1) }
  0x27   : > { %633 = vmatpush3.bf16.msra.mxu0 %v733_v3 }
  0x28   : > { %644 = vmatprep.subr.bf16.mxu0 %v835_v2 }
  0x2a   : > { %635 = vmatmul.mubr.msk.bf16.vlgmr.msra.gmra.mrb[0].mxu0 %vm266_vm2, %v249_v4 }
  0x2b   : > { %646 = vmatprep.mubr.msk.bf16.mxu0 %vm836_vm1, %v835_v2 }
  0xfd   : > { %v304_v5 = vpop.f32.mrb[0].mxu0 }
  0xfe   : > { %v310_v6 = vpack.c.bf16 %v304_v5, %v304_v5  ;;  %v636_v7 = vpop.f32.mrb[1].mxu0 }
  0xff   : > { %v307_v8 = vpop.f32.mrb[2].mxu0 }
 0x100   : > { %312 = vrot.lane.b32.xlu0 %v310_v6, %s837_s25  ;;  %v637_v9 = vpop.f32.mrb[3].mxu0 }
 0x172   : > { %v313_v10 = vpop.permute.xlu0 %312 }
 0x173   : > { %v319_v11 = vsel %vm314_vm3, %v313_v10, 0 }
 0x174   : > { %639 = vmatpush3.bf16.xpose.msra.mxu1 %v319_v11 }
 0x175   : > { %650 = vmatprep.subr.bf16.mxu1 %v835_v2 }
 0x17b   : > { %641 = vmatmul.mubr.msk.bf16.vlgmr.msra.gmra.mrb[0].mxu1 %vm314_vm3, %v310_v6 }
 0x17c   : > { %652 = vmatprep.mubr.msk.bf16.mxu1 %vm836_vm1, %v835_v2  ;;  %651 = vmatpush3.bf16.msra.mxu1 %v431_v23 }
 0x24e   : > { %v355_v12 = vpop.f32.mrb[0].mxu1 }
 0x24f   : > { %v642_v13 = vpop.f32.mrb[1].mxu1  ;;  %v362_v14 = vsel %vm361_vm4, %v355_v12, -inf }
 0x250   : > { %363 = vmax.xlane.f32.xlu0 %v362_v14  ;;  %v358_v15 = vpop.f32.mrb[2].mxu1 }
 0x251   : > { %v643_v16 = vpop.f32.mrb[3].mxu1 }
 0x2dd   : > { %v364_v17 = vpop.xlane.xlu0 %363 }
 0x2de   : > { %v365_v18 = vsub.f32 %v355_v12, %v364_v17 }
 0x2e0   : > { %v366_v19 = vmul.f32 1.442695, %v365_v18 }
 0x2e2   : > { %734 = vpow2.f32 %v366_v19 }
 0x2ec   : > { %v735_v20 = vpop.eup %734 }
 0x2ed   : > { %v368_v21 = vsel %vm361_vm4, %v735_v20, 0.0 }
 0x2ee   : > { %369 = vadd.xlane.f32.xlu1 %v368_v21 }
 0x2ff   : > { %374 = vrot.lane.b32.xlu1 %v310_v6, %s838_s26 }
 0x37b   : > { %v370_v24 = vpop.xlane.xlu1 %369 }
 0x37c   : > { %736 = vrcp.f32 %v370_v24 }
 0x37f   : > { %v375_v25 = vpop.permute.xlu1 %374 }
 0x380   : > { %v381_v26 = vsel %vm379_vm6, %v375_v25, 0 }
 0x381   : > { %645 = vmatpush3.bf16.msra.mxu0 %v381_v26 }
 0x386   : > { %v737_v27 = vpop.eup %736 }
 0x387   : > { %v372_v28 = vmul.f32 %v737_v27, %v735_v20 }
 0x389   : > { %v373_v29 = vpack.c.bf16 %v372_v28, %v372_v28 }
 0x38b   : > { %647 = vmatmul.mubr.msk.bf16.vlgmr.msra.gmra.mrb[4].mxu0 %vm361_vm4, %v373_v29 }
 0x45e   : > { %v417_v30 = vpop.f32.mrb[4].mxu0 }
 0x45f   : > { %v424_v31 = vpack.c.bf16 %v417_v30, %v417_v30  ;;  %v648_v32 = vpop.f32.mrb[5].mxu0 }
 0x460   : > { %v420_v33 = vpop.f32.mrb[6].mxu0 }
 0x461   : > { %v649_v34 = vpop.f32.mrb[7].mxu0  ;;  %653 = vmatmul.mubr.msk.bf16.vlgmr.msra.gmra.mrb[4].mxu1 %vm314_vm3, %v424_v31 }
 0x531   : > { %478 = sbr.rel (%p614_p1) target bundleno = 1346 (0x542), region = 44 }
 0x534   : > { %v467_v36 = vpop.f32.mrb[4].mxu1 }
 0x535   : > { %v473_v37 = vadd.f32 %v467_v36, %v423_v35  ;;  %v654_v38 = vpop.f32.mrb[5].mxu1 }
 0x536   : > { %v470_v39 = vpop.f32.mrb[6].mxu1 }
 0x537   : > { %474 = vst.msk [vmem:[#allocation2] sm:$0xff] %vm266_vm2, %v473_v37  ;;  %v655_v40 = vpop.f32.mrb[7].mxu1 }
 0x53e   : > { %v479_v41 = vld [vmem:[#allocation2] sm:$0xff] }
 0x53f   : > { %v487_v43 = vadd.f32 %v615_v42, %v479_v41 }
 0x541   : > { %488 = vst.msk [vmem:[%s228_s21] sm:$0xff] %vm266_vm2, %v487_v43 }
 0x542 PF: > { %s617_s9 = sshll.u32 %s820_s19, 7  ;;  %s503_s12 = sshll.u32 %s228_s21, 4  ;;  %s504_s12 = int_to_ptr.vmem [resolvable:$true] %s503_s12 }
 0x543   : > { %s980_s18 = scalar_lea.hbm %s1035_s4, %s617_s9  ;;  %s1044_s13 = sand.u32 1, %s808_s16  }
 0x544   : > { %s490_s14 = scalar_lea.sflag [#allocation4], %s1044_s13  ;;  %s738_s23 = scalar_lea.vmem %s504_s12, 128 }
 0x545   : > { %p739_p2 = scmp.ne.s32.totalorder %s504_s12, %s738_s23  ;;  %s839_s24 = smov [#allocation3]  }
 0x546   : > { %s742_s29 = sshll.u32 %s839_s24, 4  ;;  %s743_s29 = int_to_ptr.vmem [resolvable:$false] %s742_s29 }
 0x547   : > { %p740_p4 = pnand %p739_p2, %p914_p3  ;;  %s744_s30 = scalar_lea.vmem %s743_s29, 256 }
 0x548   : > { %p745_p6 = scmp.lt.s32.totalorder %s504_s12, %s743_s29  ;;  %p746_p7 = scmp.lt.s32.totalorder %s744_s30, %s738_s23 }
 0x549   : > { %p741_p5 = pneg %p740_p4 }
 0x54a   : > { %p747_p8 = por %p746_p7, %p745_p6 }
 0x54c   : > { %p748_p10 = pnand %p747_p8, %p741_p5 }
 0x54e   : > { %751 = shalt.err (!%p748_p10)
}
 0x54f   : > { %s752_s19 = scalar_lea.hbm %s980_s18, 128  ;;  %s756_s25 = scalar_lea.hbm %s1035_s4, 256 }
 0x550   : > { %p753_p11 = scmp.ne.s32.totalorder %s980_s18, %s752_s19  ;;  %p757_p0 = scmp.lt.u32.totalorder %s980_s18, %s1035_s4 }
 0x551   : > { %p758_p1 = scmp.lt.u32.totalorder %s756_s25, %s752_s19  ;;  %p760_p4 = scmp.lt.u32.totalorder %s752_s19, %s980_s18 }
 0x552   : > { %p754_p12 = pnand %p753_p11, %p914_p3 }
 0x553   : > { %p759_p2 = por %p758_p1, %p757_p0 }
 0x554   : > { %p755_p13 = pneg %p754_p12 }
 0x555   : > { %p761_p5 = por %p760_p4, %p759_p2 }
 0x557   : > { %p762_p6 = pnand %p761_p5, %p755_p13 }
 0x559   : > { %765 = shalt.err (!%p762_p6)
}
 0x55a   : > { %656 = dma.vmem_to_hbm [thread:$0]  (%p914_p3), %s504_s12, 128, %s980_s18, %s490_s14  }
 0x55b PF: > { %p662_p7 = scmp.ge.s32.totalorder %s832_s22, 2  ;;  %s515_s8 = sand.u32 1, %s804_s15  }
 0x55c   : > { %s516_s9 = scalar_lea.sflag [#allocation4], %s515_s8 }
 0x55d   : > { %p659_p8 = pnand %p662_p7, %p924_p9 }
 0x55f   : > { %799 = dma.done.wait (!%p659_p8), %s516_s9, 128  }
 0x560   : > { %801 = vsyncadd (!%p659_p8), %s516_s9, 4294967168  ;;  %s17_s22 = sadd.s32 1, %s832_s22   ;;  %s1045_s19 = sld [smem:[#allocation6_spill]] }
 0x561   : > { %p14_p10 = scmp.ge.s32.totalorder %s17_s22, 18   ;;  %s1046_s27 = sld [smem:[#allocation7_spill]] }
 0x562   : > { %s1047_s21 = sld [smem:[#allocation8_spill]]  ;;  %s1048_s15 = smov %s808_s16 }
 0x563   : > { %s1049_s16 = smov %s812_s17  ;;  %s1050_s17 = smov %s932_s5 }
 0x564   : > { %s1051_s18 = smov %s824_s20  ;;  %16 = sbr.rel (!%p14_p10) target bundleno = 5 (0x5), region = 85 }
 0x567   : > { %s1052_s20 = smov %s1046_s27 }
 0x56b   :  { %521 = vsyncpa [#allocation4], 1 }
 0x56c   :  { %523 = vsyncpa [#allocation4 + $0x1], 1 }

</bundles_post_ra>
